<compile_context>
chip_gen: v5e
topology: v5e:2x2
jax: 0.10.0
libtpu: 0.0.40
codegen_flags: <defaults>
</compile_context>

<pallas_src>
import functools
import math

import jax
import jax.numpy as jnp
from jax import lax
from jax.experimental import pallas as pl
from jax.experimental.pallas import tpu as pltpu


def _round_up(x, m):
    return ((x + m - 1) // m) * m


def _arc_margin_kernel(f_ref, w_ref, inv_f_ref, inv_w_ref, label_ref, o_ref, *,
                       tc, cls_axis, s, cos_m, sin_m, th, mm, easy_margin,
                       ls_eps, out_features):
    # f_ref     : (TB, D)  raw (un-normalized) feature tile
    # w_ref     : (TC, D)  raw weight tile
    # inv_f_ref : (TB, 1)  1/||x||  (f32, precomputed)
    # inv_w_ref : (1, TC)  1/||w||  (f32, precomputed)
    # label_ref : (TB, 1)  int32 class labels
    # o_ref     : (TB, TC) f32 output tile
    j = pl.program_id(cls_axis)          # class-tile index (grid-order aware)

    # (TB, D) x (TC, D) -> (TB, TC): contract last dims, no .T / relayout.
    raw = lax.dot_general(
        f_ref[...], w_ref[...],
        dimension_numbers=(((1,), (1,)), ((), ())),
        preferred_element_type=jnp.float32)

    # Post-scale by precomputed inverse norms == cosine similarity.
    cosine = raw * inv_f_ref[...] * inv_w_ref[...]

    # cos(theta + m). Clamp the radicand at 0 to stay finite where rounding
    # pushes |cosine| marginally above 1 (PyTorch would produce NaN there).
    sine = jnp.sqrt(jnp.maximum(1.0 - cosine * cosine, 0.0))
    phi = cosine * cos_m - sine * sin_m
    if easy_margin:
        phi = jnp.where(cosine > 0.0, phi, cosine)
    else:
        phi = jnp.where(cosine > th, phi, cosine - mm)

    # one_hot for this tile: global class id == label (iota compare replaces
    # the torch scatter_, fully vectorized on the VPU).
    col = lax.broadcasted_iota(jnp.int32, cosine.shape, 1) + j * tc
    is_target = col == label_ref[...]
    if ls_eps > 0.0:
        one_hot = is_target.astype(jnp.float32)
        one_hot = (1.0 - ls_eps) * one_hot + ls_eps / out_features
        mixed = one_hot * phi + (1.0 - one_hot) * cosine
    else:
        mixed = jnp.where(is_target, phi, cosine)

    o_ref[...] = (mixed * s).astype(o_ref.dtype)


@functools.partial(
    jax.jit,
    static_argnames=("s", "m", "easy_margin", "ls_eps", "operand_dtype"))
def arc_margin_product(features, weight, label, *, s=30.0, m=0.5,
                       easy_margin=False, ls_eps=0.0,
                       operand_dtype=jnp.float32):
    """ArcMarginProduct.forward.

    features: (B, in_features) float
    weight:   (out_features, in_features) float
    label:    (B,) int
    Returns (B, out_features) float32.
    """
    B, D = features.shape
    C, D2 = weight.shape
    assert D == D2, "feature dim mismatch"
    assert label.shape == (B,)

    s = float(s)
    m = float(m)
    ls_eps = float(ls_eps)
    cos_m = math.cos(m)
    sin_m = math.sin(m)
    th = math.cos(math.pi - m)
    mm = math.sin(math.pi - m) * m

    op_bytes = jnp.dtype(operand_dtype).itemsize

    # ---- padding / tile selection --------------------------------------
    d_pad = _round_up(D, 128)                   # full MXU contraction width
    b8 = _round_up(B, 8)
    tb = min(b8, 256)                           # sublane-aligned batch tile
    b_pad = _round_up(B, tb)

    c128 = _round_up(C, 128)                    # lane-dense output stores
    tc = min(c128, 2048)
    # keep the double-buffered working set comfortably under v7x VMEM
    budget = 20 << 20
    while tc > 128 and 2 * (tb * d_pad * op_bytes + tc * d_pad * op_bytes
                            + tb * tc * 4) > budget:
        tc -= 128
    c_pad = _round_up(C, tc)

    n_b = b_pad // tb
    n_c = c_pad // tc

    # ---- grid-order selection (minimize HBM re-streaming) --------------
    # batch-outer: weight re-read (n_b - 1) extra times;
    # class-outer: features re-read (n_c - 1) extra times.
    batch_outer_extra = c_pad * d_pad * op_bytes * (n_b - 1)
    class_outer_extra = b_pad * d_pad * op_bytes * (n_c - 1)
    batch_outer = batch_outer_extra <= class_outer_extra

    if batch_outer:
        grid = (n_b, n_c)
        cls_axis = 1
        f_map = lambda i, j: (i, 0)
        w_map = lambda i, j: (j, 0)
        invf_map = lambda i, j: (i, 0)
        invw_map = lambda i, j: (0, j)
        lab_map = lambda i, j: (i, 0)
        out_map = lambda i, j: (i, j)
    else:
        grid = (n_c, n_b)
        cls_axis = 0
        f_map = lambda j, i: (i, 0)
        w_map = lambda j, i: (j, 0)
        invf_map = lambda j, i: (i, 0)
        invw_map = lambda j, i: (0, j)
        lab_map = lambda j, i: (i, 0)
        out_map = lambda j, i: (i, j)

    # ---- host-side (cheap) precompute -----------------------------------
    f32 = features.astype(jnp.float32)
    w32 = weight.astype(jnp.float32)
    # 1 / max(||.||, 1e-12)  via rsqrt  (matches F.normalize's eps clamp)
    inv_f = lax.rsqrt(jnp.maximum(jnp.sum(f32 * f32, axis=1, keepdims=True),
                                  1e-24))                        # (B, 1)
    inv_w = lax.rsqrt(jnp.maximum(jnp.sum(w32 * w32, axis=1, keepdims=True),
                                  1e-24))                        # (C, 1)

    f_cast = features.astype(operand_dtype)
    w_cast = weight.astype(operand_dtype)
    if (b_pad, d_pad) != (B, D):
        f_p = jnp.zeros((b_pad, d_pad), operand_dtype).at[:B, :D].set(f_cast)
    else:
        f_p = f_cast
    if (c_pad, d_pad) != (C, D):
        w_p = jnp.zeros((c_pad, d_pad), operand_dtype).at[:C, :D].set(w_cast)
    else:
        w_p = w_cast
    if b_pad != B:
        inv_f_p = jnp.zeros((b_pad, 1), jnp.float32).at[:B].set(inv_f)
        label_p = jnp.zeros((b_pad, 1), jnp.int32).at[:B, 0].set(
            label.astype(jnp.int32))
    else:
        inv_f_p = inv_f
        label_p = label.astype(jnp.int32).reshape(B, 1)
    if c_pad != C:
        inv_w_p = jnp.zeros((1, c_pad), jnp.float32).at[:, :C].set(inv_w.T)
    else:
        inv_w_p = inv_w.T

    # VMEM cap: double-buffered operand/output tiles + headroom, clamped to
    # stay inside v7x's 64 MiB physical VMEM.
    per_step = (tb * d_pad * op_bytes + tc * d_pad * op_bytes + tb * tc * 4
                + (tb + tc + tb) * 4)
    vmem_limit = int(min(max(4 * per_step + (8 << 20), 32 << 20), 64 << 20))

    cost = pl.CostEstimate(
        flops=2 * b_pad * c_pad * d_pad,
        transcendentals=b_pad * c_pad,  # sqrt for sine
        bytes_accessed=(b_pad * d_pad + c_pad * d_pad) * op_bytes
        + b_pad * c_pad * 4 + (b_pad + c_pad + b_pad) * 4)

    kernel = functools.partial(
        _arc_margin_kernel, tc=tc, cls_axis=cls_axis, s=s, cos_m=cos_m,
        sin_m=sin_m, th=th, mm=mm, easy_margin=bool(easy_margin),
        ls_eps=ls_eps, out_features=C)

    out = pl.pallas_call(
        kernel,
        out_shape=jax.ShapeDtypeStruct((b_pad, c_pad), jnp.float32),
        grid=grid,
        in_specs=[
            pl.BlockSpec((tb, d_pad), f_map),     # features
            pl.BlockSpec((tc, d_pad), w_map),     # weight
            pl.BlockSpec((tb, 1), invf_map),      # 1/||x||
            pl.BlockSpec((1, tc), invw_map),      # 1/||w||
            pl.BlockSpec((tb, 1), lab_map),       # labels
        ],
        out_specs=pl.BlockSpec((tb, tc), out_map),
        compiler_params=pltpu.CompilerParams(
            dimension_semantics=("parallel", "parallel"),
            vmem_limit_bytes=vmem_limit),
        cost_estimate=cost,
    )(f_p, w_p, inv_f_p, inv_w_p, label_p)

    return out[:B, :C]


if __name__ == "__main__":
    # Small shapes consistent with the module's forward.
    B = 8
    in_features = 32
    out_features = 16
    s_scale, margin, ls_eps = 30.0, 0.5, 0.1

    key = jax.random.PRNGKey(0)
    kf, kw, kl = jax.random.split(key, 3)

    features = jax.random.normal(kf, (B, in_features), dtype=jnp.float32)
    # xavier_uniform_: U(-a, a), a = sqrt(6 / (fan_in + fan_out))
    bound = math.sqrt(6.0 / (in_features + out_features))
    weight = jax.random.uniform(kw, (out_features, in_features),
                                minval=-bound, maxval=bound,
                                dtype=jnp.float32)
    label = jax.random.randint(kl, (B,), 0, out_features, dtype=jnp.int32)

    # f32 path (exact parity with the PyTorch f32 forward).
    out = arc_margin_product(features, weight, label, s=s_scale, m=margin,
                             easy_margin=False, ls_eps=ls_eps,
                             operand_dtype=jnp.float32)
    out = jax.block_until_ready(out)

    # Pure-JAX reference of the PyTorch forward.
    fn = features / jnp.maximum(
        jnp.linalg.norm(features, axis=1, keepdims=True), 1e-12)
    wn = weight / jnp.maximum(
        jnp.linalg.norm(weight, axis=1, keepdims=True), 1e-12)
    cosine = fn @ wn.T
    sine = jnp.sqrt(jnp.maximum(1.0 - cosine * cosine, 0.0))
    phi = cosine * math.cos(margin) - sine * math.sin(margin)
    phi = jnp.where(cosine > math.cos(math.pi - margin), phi,
                    cosine - math.sin(math.pi - margin) * margin)
    one_hot = jax.nn.one_hot(label, out_features, dtype=jnp.float32)
    one_hot = (1.0 - ls_eps) * one_hot + ls_eps / out_features
    ref = (one_hot * phi + (1.0 - one_hot) * cosine) * s_scale

    assert out.shape == (B, out_features)
    assert jnp.allclose(out, ref, atol=1e-3, rtol=1e-3), (
        float(jnp.max(jnp.abs(out - ref))))

    # ls_eps = 0 specialization (jnp.where fast path).
    out0 = arc_margin_product(features, weight, label, s=s_scale, m=margin,
                              easy_margin=False, ls_eps=0.0,
                              operand_dtype=jnp.float32)
    out0 = jax.block_until_ready(out0)
    one_hot0 = jax.nn.one_hot(label, out_features, dtype=jnp.float32)
    ref0 = (one_hot0 * phi + (1.0 - one_hot0) * cosine) * s_scale
    assert jnp.allclose(out0, ref0, atol=1e-3, rtol=1e-3), (
        float(jnp.max(jnp.abs(out0 - ref0))))

    # bf16 operand streaming path (production configuration: halves HBM/VMEM
    # traffic; f32 MXU accumulator).  Numerics differ from the f32 reference
    # at ~1e-2 cosine level, so only sanity-check it here.
    out_bf16 = arc_margin_product(features, weight, label, s=s_scale,
                                  m=margin, easy_margin=False, ls_eps=ls_eps,
                                  operand_dtype=jnp.bfloat16)
    out_bf16 = jax.block_until_ready(out_bf16)
    assert out_bf16.shape == (B, out_features)
    assert bool(jnp.all(jnp.isfinite(out_bf16)))

    print("KERNEL_OK")
</pallas_src>

<mosaic_0001>
module attributes {stable_mosaic.version = 11 : i64} {
  func.func @_arc_margin_kernel(%arg0: i32, %arg1: i32, %arg2: memref<8x128xf32, #tpu.memory_space<vmem>>, %arg3: memref<128x128xf32, #tpu.memory_space<vmem>>, %arg4: memref<8x1xf32, #tpu.memory_space<vmem>>, %arg5: memref<1x128xf32, #tpu.memory_space<vmem>>, %arg6: memref<8x1xi32, #tpu.memory_space<vmem>>, %arg7: memref<8x128xf32, #tpu.memory_space<vmem>>) attributes {dimension_semantics = [#tpu.dimension_semantics<parallel>, #tpu.dimension_semantics<parallel>], iteration_bounds = array<i64: 1, 1>, scalar_prefetch = 0 : i64, scratch_operands = 0 : i64, tpu.core_type = #tpu.core_type<tc>, window_params = [{transform_indices = @transform_0, window_bounds = array<i64: 8, 128>}, {transform_indices = @transform_1, window_bounds = array<i64: 128, 128>}, {transform_indices = @transform_2, window_bounds = array<i64: 8, 1>}, {transform_indices = @transform_3, window_bounds = array<i64: 1, 128>}, {transform_indices = @transform_4, window_bounds = array<i64: 8, 1>}, {transform_indices = @transform_5, window_bounds = array<i64: 8, 128>}]} {
    %c0 = arith.constant 0 : index
    %c0_0 = arith.constant 0 : index
    %0 = vector.load %arg2[%c0, %c0_0] : memref<8x128xf32, #tpu.memory_space<vmem>>, vector<8x128xf32>
    %c0_1 = arith.constant 0 : index
    %c0_2 = arith.constant 0 : index
    %1 = vector.load %arg3[%c0_1, %c0_2] : memref<128x128xf32, #tpu.memory_space<vmem>>, vector<128x128xf32>
    %cst = arith.constant dense<0.000000e+00> : vector<8x128xf32>
    %2 = tpu.matmul %0, %1, %cst {dimension_numbers = #tpu.dot_dimension_numbers<[1], [1], [0], [0], [0, 0, 1, 0], [], []>} : vector<8x128xf32>, vector<128x128xf32>, vector<8x128xf32> -> vector<8x128xf32>
    %c0_3 = arith.constant 0 : index
    %c0_4 = arith.constant 0 : index
    %3 = vector.load %arg4[%c0_3, %c0_4] : memref<8x1xf32, #tpu.memory_space<vmem>>, vector<8x1xf32>
    %4 = vector.broadcast %3 : vector<8x1xf32> to vector<8x128xf32>
    %5 = arith.mulf %2, %4 : vector<8x128xf32>
    %c0_5 = arith.constant 0 : index
    %c0_6 = arith.constant 0 : index
    %6 = vector.load %arg5[%c0_5, %c0_6] : memref<1x128xf32, #tpu.memory_space<vmem>>, vector<1x128xf32>
    %7 = vector.broadcast %6 : vector<1x128xf32> to vector<8x128xf32>
    %8 = arith.mulf %5, %7 : vector<8x128xf32>
    %9 = arith.mulf %8, %8 : vector<8x128xf32>
    %cst_7 = arith.constant 1.000000e+00 : f32
    %10 = vector.broadcast %cst_7 : f32 to vector<8x128xf32>
    %11 = arith.subf %10, %9 : vector<8x128xf32>
    %cst_8 = arith.constant 0.000000e+00 : f32
    %12 = vector.broadcast %cst_8 : f32 to vector<8x128xf32>
    %13 = arith.maximumf %11, %12 : vector<8x128xf32>
    %14 = math.sqrt %13 : vector<8x128xf32>
    %cst_9 = arith.constant 0.87758255 : f32
    %15 = vector.broadcast %cst_9 : f32 to vector<8x128xf32>
    %16 = arith.mulf %8, %15 : vector<8x128xf32>
    %cst_10 = arith.constant 0.47942555 : f32
    %17 = vector.broadcast %cst_10 : f32 to vector<8x128xf32>
    %18 = arith.mulf %14, %17 : vector<8x128xf32>
    %19 = arith.subf %16, %18 : vector<8x128xf32>
    %cst_11 = arith.constant -0.87758255 : f32
    %20 = vector.broadcast %cst_11 : f32 to vector<8x128xf32>
    %21 = arith.cmpf ogt, %8, %20 : vector<8x128xf32>
    %cst_12 = arith.constant 0.239712775 : f32
    %22 = vector.broadcast %cst_12 : f32 to vector<8x128xf32>
    %23 = arith.subf %8, %22 : vector<8x128xf32>
    %24 = arith.select %21, %19, %23 : vector<8x128xi1>, vector<8x128xf32>
    %25 = tpu.iota {dimensions = array<i32: 1>} : vector<8x128xi32>
    %c128_i32 = arith.constant 128 : i32
    %26 = arith.muli %arg1, %c128_i32 : i32
    %27 = vector.broadcast %26 : i32 to vector<8x128xi32>
    %28 = arith.addi %25, %27 : vector<8x128xi32>
    %c0_13 = arith.constant 0 : index
    %c0_14 = arith.constant 0 : index
    %29 = vector.load %arg6[%c0_13, %c0_14] : memref<8x1xi32, #tpu.memory_space<vmem>>, vector<8x1xi32>
    %30 = vector.broadcast %29 : vector<8x1xi32> to vector<8x128xi32>
    %31 = arith.cmpi eq, %28, %30 : vector<8x128xi32>
    %32 = arith.extui %31 : vector<8x128xi1> to vector<8x128xi32>
    %33 = arith.sitofp %32 : vector<8x128xi32> to vector<8x128xf32>
    %cst_15 = arith.constant 0.899999976 : f32
    %34 = vector.broadcast %cst_15 : f32 to vector<8x128xf32>
    %35 = arith.mulf %34, %33 : vector<8x128xf32>
    %cst_16 = arith.constant 6.250000e-03 : f32
    %36 = vector.broadcast %cst_16 : f32 to vector<8x128xf32>
    %37 = arith.addf %35, %36 : vector<8x128xf32>
    %38 = arith.mulf %37, %24 : vector<8x128xf32>
    %cst_17 = arith.constant 1.000000e+00 : f32
    %39 = vector.broadcast %cst_17 : f32 to vector<8x128xf32>
    %40 = arith.subf %39, %37 : vector<8x128xf32>
    %41 = arith.mulf %40, %8 : vector<8x128xf32>
    %42 = arith.addf %38, %41 : vector<8x128xf32>
    %cst_18 = arith.constant 3.000000e+01 : f32
    %43 = vector.broadcast %cst_18 : f32 to vector<8x128xf32>
    %44 = arith.mulf %42, %43 : vector<8x128xf32>
    %c0_19 = arith.constant 0 : index
    %c0_20 = arith.constant 0 : index
    %45 = vector.load %arg7[%c0_19, %c0_20] : memref<8x128xf32, #tpu.memory_space<vmem>>, vector<8x128xf32>
    tpu.vector_store %arg7[%c0_19, %c0_20], %44 {strides = array<i32>} : memref<8x128xf32, #tpu.memory_space<vmem>>, vector<8x128xf32>,
    return
  }
  func.func @transform_0(%arg0: i32, %arg1: i32) -> (i32, i32) {
    %c0_i32 = arith.constant 0 : i32
    %c0_i32_0 = arith.constant 0 : i32
    return %arg0, %c0_i32 : i32, i32
  }
  func.func @transform_1(%arg0: i32, %arg1: i32) -> (i32, i32) {
    %c0_i32 = arith.constant 0 : i32
    %c0_i32_0 = arith.constant 0 : i32
    return %arg1, %c0_i32 : i32, i32
  }
  func.func @transform_2(%arg0: i32, %arg1: i32) -> (i32, i32) {
    %c0_i32 = arith.constant 0 : i32
    %c0_i32_0 = arith.constant 0 : i32
    return %arg0, %c0_i32 : i32, i32
  }
  func.func @transform_3(%arg0: i32, %arg1: i32) -> (i32, i32) {
    %c0_i32 = arith.constant 0 : i32
    %c0_i32_0 = arith.constant 0 : i32
    return %c0_i32, %arg1 : i32, i32
  }
  func.func @transform_4(%arg0: i32, %arg1: i32) -> (i32, i32) {
    %c0_i32 = arith.constant 0 : i32
    %c0_i32_0 = arith.constant 0 : i32
    return %arg0, %c0_i32 : i32, i32
  }
  func.func @transform_5(%arg0: i32, %arg1: i32) -> (i32, i32) {
    %c0_i32 = arith.constant 0 : i32
    return %arg0, %arg1 : i32, i32
  }
}

</mosaic_0001>

<bundles_post_ra>
// kernel: arc_margin_product.1
= control target key start
LH: loop header
LB: loop body
LE: loop exit
PB: predicated region body
PF: predicated region fallthrough
CT: control target
= control target key end

     0   :  { %s258_s0 = inlined_call_operand.vmem [shape: f32[8,128], index: 0, kind: input, shape index: {}]   ;;  %s259_s1 = inlined_call_operand.vmem [shape: f32[128,128], index: 1, kind: input, shape index: {}]   ;;  %s260_s2 = inlined_call_operand.vmem [shape: f32[8,1], index: 2, kind: input, shape index: {}]   ;;  %s261_s3 = inlined_call_operand.vmem [shape: f32[1,128], index: 3, kind: input, shape index: {}]   ;;  %s262_s4 = inlined_call_operand.vmem [shape: s32[8,1], index: 4, kind: input, shape index: {}]   ;;  %s263_s5 = inlined_call_operand.hbm [shape: f32[8,128], index: 5, kind: output, shape index: {}]  }
   0x1   :  { %v37_v0 = vld [vmem:[%s259_s1 + $0x78] sm:$0xff]  ;;  %v36_v1 = vld [vmem:[%s259_s1 + $0x70] sm:$0xff] }
   0x2   :  { %38 = vmatpush.xpose.msra.mxu0 %v37_v0 }
   0x3   :  { %10 = vsyncpa [#allocation3], 0  ;;  %v35_v2 = vld [vmem:[%s259_s1 + $0x68] sm:$0xff]  ;;  %v34_v3 = vld [vmem:[%s259_s1 + $0x60] sm:$0xff]  ;;  %v162_v10 = vmov 0   ;;  %v91_v28 = vlaneseq  ;;  %v163_v34 = vmov 0.0  }
   0x4   :  { %v33_v4 = vld [vmem:[%s259_s1 + $0x58] sm:$0xff]  ;;  %v32_v5 = vld [vmem:[%s259_s1 + $0x50] sm:$0xff]  ;;  %v31_v6 = vld [vmem:[%s259_s1 + $0x48] sm:$0xff]  ;;  %132 = vset.pattern.permute.xlu0 %v162_v10  ;;  %s118_s7 = sshll.u32 %s263_s5, 4  ;;  %s119_s7 = int_to_ptr.hbm [resolvable:$true] %s118_s7 }
   0x5   :  { %v30_v7 = vld [vmem:[%s259_s1 + $0x40] sm:$0xff]  ;;  %v29_v9 = vld [vmem:[%s259_s1 + $0x38] sm:$0xff]  ;;  %v28_v11 = vld [vmem:[%s259_s1 + $0x30] sm:$0xff]  ;;  %v92_v29 = vand.u32 127, %v91_v28 }
   0x6   :  { %39 = vmatpush.xpose.msra.mxu0 %v36_v1  ;;  %v58_v8 = vld [vmem:[%s260_s2] sm:$0xff]  ;;  %v27_v13 = vld [vmem:[%s259_s1 + $0x28] sm:$0xff]  ;;  %v25_v15 = vld [vmem:[%s259_s1 + $0x18] sm:$0xff] }
   0x7   :  { %61 = vperm.xlu0 %132, %v58_v8   ;;  %v96_v12 = vld [vmem:[%s262_s4] sm:$0xff]  ;;  %v24_v16 = vld [vmem:[%s259_s1 + $0x10] sm:$0xff]  ;;  %v23_v17 = vld [vmem:[%s259_s1 + $0x8] sm:$0xff] }
   0x8   :  { %v26_v14 = vld [vmem:[%s259_s1 + $0x20] sm:$0xff] }
   0x9   :  { %v22_v18 = vld [vmem:[%s259_s1] sm:$0xff] }
   0xa   :  { %40 = vmatpush.xpose.msra.mxu0 %v35_v2  ;;  %v21_v19 = vld [vmem:[%s258_s0] sm:$0xff]  ;;  %s164_s0 = smov [#allocation2]  }
   0xb   :  { %v133_v20 = vld [vmem:[%s261_s3] ss:$0 sm:$0xff]  ;;  %s116_s1 = sshll.u32 %s164_s0, 4  ;;  %s117_s1 = int_to_ptr.vmem [resolvable:$true] %s116_s1 }
   0xe   :  { %41 = vmatpush.xpose.msra.mxu0 %v34_v3 }
   0xf   :  { %98 = vperm.xlu0 %132, %v96_v12  }
  0x12   :  { %42 = vmatpush.xpose.msra.mxu0 %v33_v4 }
  0x16   :  { %43 = vmatpush.xpose.msra.mxu0 %v32_v5 }
  0x1a   :  { %44 = vmatpush.xpose.msra.mxu0 %v31_v6 }
  0x1e   :  { %45 = vmatpush.xpose.msra.mxu0 %v30_v7 }
  0x22   :  { %46 = vmatpush.xpose.msra.mxu0 %v29_v9 }
  0x26   :  { %47 = vmatpush.xpose.msra.mxu0 %v28_v11 }
  0x2a   :  { %48 = vmatpush.xpose.msra.mxu0 %v27_v13 }
  0x2e   :  { %49 = vmatpush.xpose.msra.mxu0 %v26_v14 }
  0x32   :  { %50 = vmatpush.xpose.msra.mxu0 %v25_v15 }
  0x36   :  { %51 = vmatpush.xpose.msra.mxu0 %v24_v16 }
  0x3a   :  { %52 = vmatpush.xpose.msra.mxu0 %v23_v17 }
  0x3e   :  { %53 = vmatpush.xpose.msra.mxu0 %v22_v18 }
  0x41   :  { %54 = vmatmul.f32.vlgmr.msra.gmra.mxu0 %v21_v19 }
  0x79   :  { %v62_v21 = vpop.permute.xlu0 %61 }
  0x81   :  { %v99_v30 = vpop.permute.xlu0 %98 }
  0x82   :  { %vm100_vm0 = vcmp.eq.s32.totalorder %v92_v29, %v99_v30 }
  0x83   :  { %v128_v35 = vsel %vm100_vm0, 1.0, %v163_v34 }
  0x84   :  { %v103_v38 = vmul.f32 0.9, %v128_v35 }
  0x86   :  { %v104_v41 = vadd.f32 0.00625, %v103_v38 }
  0x88   :  { %v106_v47 = vsub.f32 1.0, %v104_v41 }
  0xbe   :  { %v55_v22 = vpop.f32.mrf.mxu0 }
  0xbf   :  { %v64_v23 = vmul.f32 %v62_v21, %v55_v22 }
  0xc1   :  { %v69_v24 = vmul.f32 %v133_v20, %v64_v23 }
  0xc3   :  { %v70_v25 = vmul.f32 %v69_v24, %v69_v24  ;;  %v85_v45 = vmul.f32 0.87758255, %v69_v24  ;;  %v127_v49 = vadd.f32 -0.23971277, %v69_v24  ;;  %vm88_vm3 = vcmp.gt.f32.partialorder %v69_v24, -0.87758255 }
  0xc4   :  { %v107_v52 = vmul.f32 %v106_v47, %v69_v24 }
  0xc5   :  { %v71_v26 = vsub.f32 1.0, %v70_v25 }
  0xc7   :  { %v72_v27 = vmax.f32 %v71_v26, 0.0 }
  0xc9   :  { %134 = vrsqrt.f32 %v72_v27  ;;  %vm80_vm1 = vcmp.eq.f32.partialorder %v72_v27, inf  ;;  %v83_v42 = vand.u32 2147483648, %v72_v27  ;;  %vm82_vm2 = vcmp.eq.f32.partialorder %v72_v27, 0.0 }
  0xcf   :  { %v135_v31 = vpop.eup %134 }
  0xd0   :  { %v74_v32 = vmul.f32 %v135_v31, %v72_v27 }
  0xd2   :  { %v75_v33 = vmul.f32 %v135_v31, %v74_v32 }
  0xd4   :  { %v76_v36 = vmul.f32 0.5, %v75_v33 }
  0xd6   :  { %v77_v37 = vsub.f32 1.5, %v76_v36 }
  0xd8   :  { %v78_v39 = vmul.f32 %v135_v31, %v77_v37 }
  0xda   :  { %v79_v40 = vmul.f32 %v78_v39, %v72_v27 }
  0xdc   :  { %v81_v43 = vsel %vm80_vm1, %v72_v27, %v79_v40 }
  0xdd   :  { %v84_v44 = vsel %vm82_vm2, %v83_v42, %v81_v43 }
  0xde   :  { %v86_v46 = vmul.f32 0.47942555, %v84_v44 }
  0xe0   :  { %v87_v48 = vsub.f32 %v85_v45, %v86_v46 }
  0xe2   :  { %v90_v50 = vsel %vm88_vm3, %v87_v48, %v127_v49 }
  0xe3   :  { %v105_v51 = vmul.f32 %v104_v41, %v90_v50 }
  0xe5   :  { %v108_v53 = vadd.f32 %v107_v52, %v105_v51 }
  0xe7   :  { %v109_v54 = vmul.f32 30.0, %v108_v53 }
  0xe9   :  { %110 = vst [vmem:[#allocation2] sm:$0xff] %v109_v54 }
  0xea   :  { %121 = dma.vmem_to_hbm [thread:$0]  %s117_s1, 128, %s119_s7, [#allocation3]  }
  0xeb   :  { %160 = dma.done.wait [#allocation3], 128  }
  0xec   :  { %161 = vsyncadd [#allocation3], 4294967168 }
  0xed   :  { %126 = vsyncpa [#allocation3], 1 }

</bundles_post_ra>
